<compile_context>
chip_gen: v5e
topology: v5e:2x2
jax: 0.10.0
libtpu: 0.0.40
codegen_flags: <defaults>
</compile_context>

<pallas_src>
import functools

import jax
import jax.numpy as jnp
from jax import lax
from jax.experimental import pallas as pl
from jax.experimental.pallas import tpu as pltpu

LANE = 128                 # vreg lane width
SUB = 8                    # f32 sublane height; accumulator is (SUB, LANE)
BLOCK_BYTES = 4 << 20      # HBM read budget per input per grid step


def _mse_kernel(x_ref, t_ref, loss_ref, acc_ref, *,
                inv_n, tm, valid_rows, blocks_per_core, total_blocks,
                needs_tail, has_overhang):
    """Accumulate sum((t - x)^2) into an (8, LANE) f32 VMEM accumulator.

    Steady state: load x/t block, upcast, square-diff, tree-add the tm/8
    sub-tiles into the single-vreg accumulator (no masking, no acc RMW per
    vreg).  The tail mask and the skip of clamped duplicate blocks are gated
    under pl.when so they cost nothing in the hot loop.  Finalize (single
    cross-lane reduce + mean scale) runs only on the last sequential step.
    """
    c = pl.program_id(0)        # core / shard index ("parallel")
    j = pl.program_id(1)        # row-block index within the shard ("arbitrary")
    lb = c * blocks_per_core + j   # logical (unclamped) block index

    @pl.when(j == 0)
    def _init():
        acc_ref[...] = jnp.zeros_like(acc_ref)

    def accumulate(d):
        d2 = d * d
        # (tm,128) -> (tm//8, 8, 128) is tile-aligned; the axis-0 sum is pure
        # VALU vreg adds (no XLU, no copy).
        acc_ref[...] += jnp.sum(d2.reshape(tm // SUB, SUB, LANE), axis=0)

    # In-kernel upcast: bf16/f16 inputs are loaded narrow and widened here.
    d = t_ref[...].astype(jnp.float32) - x_ref[...].astype(jnp.float32)
    last_real = total_blocks - 1

    if not (needs_tail or has_overhang):
        # Clean tiling: every block is full and in range.
        accumulate(d)
    else:
        fast = (lb < last_real) if needs_tail else (lb <= last_real)

        @pl.when(fast)
        def _fast():
            accumulate(d)

        if needs_tail:
            @pl.when(lb == last_real)
            def _tail():
                # Mask BEFORE squaring: out-of-range rows may hold garbage
                # (possibly NaN/Inf) and must not reach the accumulator.
                rid = (lax.broadcasted_iota(jnp.int32, d.shape, 0)
                       + last_real * tm)
                accumulate(jnp.where(rid < valid_rows, d, 0.0))
        # lb > last_real: clamped duplicate block from the core split ->
        # compute skipped entirely (only its prefetch DMA was spent).

    @pl.when(j == blocks_per_core - 1)
    def _finalize():
        partial = jnp.sum(acc_ref[...]) * inv_n
        loss_ref[...] = jnp.broadcast_to(partial, loss_ref.shape).astype(
            loss_ref.dtype)


def _as_lane_matrix(a):
    """Flatten to (rows, LANE). Pads (a copy) only if numel % 128 != 0."""
    flat = a.reshape(-1)
    n = flat.shape[0]
    rem = n % LANE
    if rem != 0:
        # TODO(synk): could be avoided with a fully index-masked 1-D layout;
        # the pad is <= 127 elements but does materialize a copy.
        flat = jnp.pad(flat, (0, LANE - rem))
    return flat.reshape(-1, LANE)


def _sublane_multiple(*dtypes):
    # f32 -> 8, bf16/f16 -> 16, int8/fp8 -> 32 (native sublane packing).
    itemsize = min(jnp.dtype(d).itemsize for d in dtypes)
    return max(SUB, 32 // itemsize)


def _default_num_cores():
    # 2-way "parallel" sharding only pays off on 2-TensorCore chips (v7x);
    # on single-TC v5e/v6e it just serializes and can add a duplicate block.
    try:
        kind = jax.devices()[0].device_kind.lower().replace(" ", "")
    except Exception:  # pragma: no cover - defensive
        return 1
    return 2 if ("v7" in kind or "tpu7" in kind) else 1


def content_loss_forward(target, x, *, num_cores=None, block_bytes=BLOCK_BYTES):
    """Mirrors ContentLoss.forward: returns (loss, input).

    `loss` == F.mse_loss(target, input) (mean over all elements, computed in
    f32); `input` is returned unchanged (identity pass-through).
    """
    assert target.shape == x.shape, "target/input shape mismatch"
    if num_cores is None:
        num_cores = _default_num_cores()
    n = x.size

    x2d = _as_lane_matrix(x)
    t2d = _as_lane_matrix(target)
    rows = x2d.shape[0]

    isx = jnp.dtype(x2d.dtype).itemsize
    ist = jnp.dtype(t2d.dtype).itemsize
    mult = _sublane_multiple(x2d.dtype, t2d.dtype)

    # Dtype-aware row-block size: ~block_bytes of HBM reads per input per
    # grid step (amortizes per-step pipeline overhead on all generations).
    tm = max(1, block_bytes // (LANE * max(isx, ist)))
    tm = min(tm, pl.cdiv(rows, num_cores))
    tm = max(mult, ((tm + mult - 1) // mult) * mult)   # sublane-tile aligned

    total_blocks = pl.cdiv(rows, tm)
    blocks_per_core = pl.cdiv(total_blocks, num_cores)
    needs_tail = (rows % tm) != 0                       # partial last block
    has_overhang = num_cores * blocks_per_core > total_blocks
    last_block = total_blocks - 1

    def in_map(c, j):
        lb = c * blocks_per_core + j
        if has_overhang:
            # Clamp so the DMA never targets a fully out-of-bounds block; the
            # kernel skips the compute for those duplicate steps.
            lb = jnp.minimum(lb, last_block)
        return (lb, 0)

    kernel = functools.partial(
        _mse_kernel,
        inv_n=1.0 / n,
        tm=tm,
        valid_rows=rows,
        blocks_per_core=blocks_per_core,
        total_blocks=total_blocks,
        needs_tail=needs_tail,
        has_overhang=has_overhang,
    )

    # VMEM budget: 2 inputs x 2 buffers x block + (8,LANE) acc + tiny output.
    # TODO(synk): two-level accumulation if numel approaches ~1e9 (each acc
    # element currently sums ~numel/1024 f32 terms).
    vmem_needed = 2 * tm * LANE * (isx + ist) + SUB * LANE * 4 + (1 << 16)
    vmem_limit = min(max(int(vmem_needed * 1.5) + (1 << 20), 32 << 20),
                     56 << 20)

    cost = pl.CostEstimate(
        flops=3 * n,                   # sub + mul + add per element
        transcendentals=0,
        bytes_accessed=n * (isx + ist) + num_cores * LANE * 4,
    )

    out = pl.pallas_call(
        kernel,
        out_shape=jax.ShapeDtypeStruct((1, num_cores * LANE), jnp.float32),
        grid=(num_cores, blocks_per_core),
        in_specs=[
            pl.BlockSpec((tm, LANE), in_map),
            pl.BlockSpec((tm, LANE), in_map),
        ],
        out_specs=pl.BlockSpec((1, LANE), lambda c, j: (0, c)),
        scratch_shapes=[pltpu.VMEM((SUB, LANE), jnp.float32)],
        compiler_params=pltpu.CompilerParams(
            dimension_semantics=("parallel", "arbitrary"),
            vmem_limit_bytes=vmem_limit),
        cost_estimate=cost,
    )(x2d, t2d)

    # Sum the per-core partials (each already scaled by 1/n).
    loss = jnp.sum(out.reshape(num_cores, LANE)[:, 0])
    return loss, x   # identity pass-through, like the PyTorch module


if __name__ == "__main__":
    key = jax.random.PRNGKey(0)

    # (shape, dtype, extra kwargs) — small shapes, hitting every code path:
    cases = [
        ((2, 4, 16, 16), jnp.float32, {}),                 # clean tiling
        ((2, 3, 16, 16), jnp.float32, {}),                 # masked tail block
        ((1, 3, 8, 10), jnp.float32, {}),                  # lane-pad fallback
        ((2, 4, 16, 16), jnp.bfloat16, {}),                # in-kernel upcast
        ((2, 4, 16, 16), jnp.float32,                      # 2-core shard path
         dict(num_cores=2, block_bytes=4096)),
        ((2, 5, 16, 16), jnp.float32,                      # tail + overhang
         dict(num_cores=2, block_bytes=4096)),
    ]

    for shape, dtype, kwargs in cases:
        key, k_t, k_x = jax.random.split(key, 3)
        target = jax.random.normal(k_t, shape, dtype=jnp.float32).astype(dtype)
        x = jax.random.normal(k_x, shape, dtype=jnp.float32).astype(dtype)

        loss, out = content_loss_forward(target, x, **kwargs)
        loss = jax.block_until_ready(loss)
        out = jax.block_until_ready(out)

        ref = jnp.mean(
            (target.astype(jnp.float32) - x.astype(jnp.float32)) ** 2)
        assert jnp.allclose(loss, ref, rtol=1e-5, atol=1e-6), (
            shape, dtype, kwargs, loss, ref)
        # Forward returns the input unchanged.
        assert out.shape == x.shape and out.dtype == x.dtype
        assert jnp.array_equal(out, x)

    print("KERNEL_OK")
</pallas_src>

<mosaic_0001>
module attributes {stable_mosaic.version = 11 : i64} {
  func.func @_mse_kernel(%arg0: i32, %arg1: i32, %arg2: memref<16x128xf32, #tpu.memory_space<vmem>>, %arg3: memref<16x128xf32, #tpu.memory_space<vmem>>, %arg4: memref<1x128xf32, #tpu.memory_space<vmem>>, %arg5: memref<8x128xf32, #tpu.memory_space<vmem>>) attributes {dimension_semantics = [#tpu.dimension_semantics<parallel>, #tpu.dimension_semantics<arbitrary>], iteration_bounds = array<i64: 1, 1>, scalar_prefetch = 0 : i64, scratch_operands = 1 : i64, tpu.core_type = #tpu.core_type<tc>, window_params = [{transform_indices = @transform_0, window_bounds = array<i64: 16, 128>}, {transform_indices = @transform_1, window_bounds = array<i64: 16, 128>}, {transform_indices = @transform_2, window_bounds = array<i64: 1, 128>}]} {
    %c0_i32 = arith.constant 0 : i32
    %0 = arith.cmpi eq, %arg1, %c0_i32 : i32
    %1 = arith.extui %0 : i1 to i32
    %c0_i32_0 = arith.constant 0 : i32
    %2 = arith.cmpi ne, %1, %c0_i32_0 : i32
    scf.if %2 {
      %cst_10 = arith.constant 0.000000e+00 : f32
      %15 = vector.broadcast %cst_10 : f32 to vector<8x128xf32>
      %c0_11 = arith.constant 0 : index
      %c0_12 = arith.constant 0 : index
      %16 = vector.load %arg5[%c0_11, %c0_12] : memref<8x128xf32, #tpu.memory_space<vmem>>, vector<8x128xf32>
      tpu.vector_store %arg5[%c0_11, %c0_12], %15 {strides = array<i32>} : memref<8x128xf32, #tpu.memory_space<vmem>>, vector<8x128xf32>,
    } else {
    }
    %c0 = arith.constant 0 : index
    %c0_1 = arith.constant 0 : index
    %3 = vector.load %arg3[%c0, %c0_1] : memref<16x128xf32, #tpu.memory_space<vmem>>, vector<16x128xf32>
    %c0_2 = arith.constant 0 : index
    %c0_3 = arith.constant 0 : index
    %4 = vector.load %arg2[%c0_2, %c0_3] : memref<16x128xf32, #tpu.memory_space<vmem>>, vector<16x128xf32>
    %5 = arith.subf %3, %4 : vector<16x128xf32>
    %6 = arith.mulf %5, %5 : vector<16x128xf32>
    %c0_4 = arith.constant 0 : index
    %c0_5 = arith.constant 0 : index
    %7 = vector.load %arg5[%c0_4, %c0_5] : memref<8x128xf32, #tpu.memory_space<vmem>>, vector<8x128xf32>
    %8 = vector.shape_cast %6 : vector<16x128xf32> to vector<2x8x128xf32>
    %cst = arith.constant dense<0.000000e+00> : vector<8x128xf32>
    %9 = vector.multi_reduction <add>, %8, %cst [0] : vector<2x8x128xf32> to vector<8x128xf32>
    %10 = arith.addf %7, %9 : vector<8x128xf32>
    %c0_6 = arith.constant 0 : index
    %c0_7 = arith.constant 0 : index
    %11 = vector.load %arg5[%c0_6, %c0_7] : memref<8x128xf32, #tpu.memory_space<vmem>>, vector<8x128xf32>
    tpu.vector_store %arg5[%c0_6, %c0_7], %10 {strides = array<i32>} : memref<8x128xf32, #tpu.memory_space<vmem>>, vector<8x128xf32>,
    %c0_i32_8 = arith.constant 0 : i32
    %12 = arith.cmpi eq, %arg1, %c0_i32_8 : i32
    %13 = arith.extui %12 : i1 to i32
    %c0_i32_9 = arith.constant 0 : i32
    %14 = arith.cmpi ne, %13, %c0_i32_9 : i32
    scf.if %14 {
      %c0_10 = arith.constant 0 : index
      %c0_11 = arith.constant 0 : index
      %15 = vector.load %arg5[%c0_10, %c0_11] : memref<8x128xf32, #tpu.memory_space<vmem>>, vector<8x128xf32>
      %16 = vector.shape_cast %15 : vector<8x128xf32> to vector<1x8x128xf32>
      %cst_12 = arith.constant dense<0.000000e+00> : vector<1xf32>
      %17 = vector.multi_reduction <add>, %16, %cst_12 [1, 2] : vector<1x8x128xf32> to vector<1xf32>
      %18 = vector.shape_cast %17 : vector<1xf32> to vector<1x1x1xf32>
      %19 = vector.extract %18[0, 0, 0] : f32 from vector<1x1x1xf32>
      %cst_13 = arith.constant 4.8828125E-4 : f32
      %20 = arith.mulf %19, %cst_13 : f32
      %21 = vector.broadcast %20 : f32 to vector<1x128xf32>
      %c0_14 = arith.constant 0 : index
      %c0_15 = arith.constant 0 : index
      %22 = vector.load %arg4[%c0_14, %c0_15] : memref<1x128xf32, #tpu.memory_space<vmem>>, vector<1x128xf32>
      tpu.vector_store %arg4[%c0_14, %c0_15], %21 {strides = array<i32>} : memref<1x128xf32, #tpu.memory_space<vmem>>, vector<1x128xf32>,
    } else {
    }
    return
  }
  func.func @transform_0(%arg0: i32, %arg1: i32) -> (i32, i32) {
    %c1_i32 = arith.constant 1 : i32
    %0 = arith.muli %arg0, %c1_i32 : i32
    %1 = arith.addi %0, %arg1 : i32
    %c0_i32 = arith.constant 0 : i32
    %c0_i32_0 = arith.constant 0 : i32
    return %1, %c0_i32 : i32, i32
  }
  func.func @transform_1(%arg0: i32, %arg1: i32) -> (i32, i32) {
    %c1_i32 = arith.constant 1 : i32
    %0 = arith.muli %arg0, %c1_i32 : i32
    %1 = arith.addi %0, %arg1 : i32
    %c0_i32 = arith.constant 0 : i32
    %c0_i32_0 = arith.constant 0 : i32
    return %1, %c0_i32 : i32, i32
  }
  func.func @transform_2(%arg0: i32, %arg1: i32) -> (i32, i32) {
    %c0_i32 = arith.constant 0 : i32
    %c0_i32_0 = arith.constant 0 : i32
    return %c0_i32, %arg0 : i32, i32
  }
}

</mosaic_0001>

<bundles_post_ra>
// kernel: tpu_custom_call.1
= control target key start
LH: loop header
LB: loop body
LE: loop exit
PB: predicated region body
PF: predicated region fallthrough
CT: control target
= control target key end

     0   :  { %7 = vsyncpa [#allocation4], 0  ;;  %s221_s0 = inlined_call_operand.hbm [shape: f32[16,128], index: 0, kind: input, shape index: {}]   ;;  %s222_s1 = inlined_call_operand.hbm [shape: f32[16,128], index: 1, kind: input, shape index: {}]   ;;  %s223_s2 = inlined_call_operand.hbm [shape: f32[1,128], index: 2, kind: output, shape index: {}]  }
   0x1   :  { %8 = vsyncpa [#allocation7], 0 }
   0x2   :  { %9 = vsyncpa [#allocation5], 0  ;;  %s18_s11 = sshll.u32 %s221_s0, 4  ;;  %s192_s12 = smov [#allocation3]   ;;  %s19_s11 = int_to_ptr.hbm [resolvable:$true] %s18_s11 }
   0x3   :  { %s20_s13 = sshll.u32 %s192_s12, 4  ;;  %s35_s16 = sshll.u32 %s222_s1, 4  ;;  %s21_s13 = int_to_ptr.vmem [resolvable:$true] %s20_s13  ;;  %s36_s16 = int_to_ptr.hbm [resolvable:$true] %s35_s16 }
   0x4   :  { %s193_s17 = smov 128   ;;  %s194_s18 = smov 8  }
   0x5   :  { %26 = dma.hbm_to_vmem [thread:$0]  %s19_s11, 256, %s21_s13, [#allocation4], %s193_s17, %s193_s17, %s194_s18  }
   0x6   :  { %s195_s19 = smov [#allocation6]  }
   0x7   :  { %s37_s20 = sshll.u32 %s195_s19, 4  ;;  %s38_s20 = int_to_ptr.vmem [resolvable:$true] %s37_s20 }
   0x8   :  { %43 = dma.hbm_to_vmem [thread:$0]  %s36_s16, 256, %s38_s20, [#allocation7], %s193_s17, %s193_s17, %s194_s18  }
   0x9   :  { %186 = dma.done.wait [#allocation4], 256  }
   0xa   :  { %187 = vsyncadd [#allocation4], 4294967040 }
   0xb   :  { %188 = dma.done.wait [#allocation7], 256  }
   0xc   :  { %189 = vsyncadd [#allocation7], 4294967040  ;;  %v61_v0 = vld [vmem:[#allocation6] sm:$0xff]  ;;  %v62_v1 = vld [vmem:[#allocation6 + $0x8] sm:$0xff]  ;;  %s196_s0 = smov [#allocation8]   ;;  %s96_s23 = sshll.u32 %s223_s2, 4  ;;  %s97_s23 = int_to_ptr.hbm [resolvable:$true] %s96_s23 }
   0xd   :  { %v63_v2 = vld [vmem:[#allocation3] sm:$0xff]  ;;  %v64_v3 = vld [vmem:[#allocation3 + $0x8] sm:$0xff]  ;;  %s94_s1 = sshll.u32 %s196_s0, 4  ;;  %s95_s1 = int_to_ptr.vmem [resolvable:$true] %s94_s1 }
   0xe   :  { %v65_v4 = vsub.f32 %v61_v0, %v63_v2  ;;  %v66_v5 = vsub.f32 %v62_v1, %v64_v3 }
  0x10   :  { %v67_v6 = vmul.f32 %v65_v4, %v65_v4  ;;  %v68_v7 = vmul.f32 %v66_v5, %v66_v5 }
  0x12   :  { %v70_v8 = vadd.f32 %v68_v7, %v67_v6 }
  0x14   :  { %77 = vadd.xlane.f32.xlu0 %v70_v8 }
  0x87   :  { %v78_v9 = vpop.xlane.xlu0 %77 }
  0x88   :  { %v79_v10 = vrot.slane %v78_v9, 4 }
  0x8a   :  { %v80_v11 = vadd.f32 %v79_v10, %v78_v9 }
  0x8c   :  { %v81_v12 = vrot.slane %v80_v11, 2 }
  0x8e   :  { %v82_v13 = vadd.f32 %v81_v12, %v80_v11 }
  0x90   :  { %v83_v14 = vrot.slane %v82_v13, 1 }
  0x92   :  { %v84_v15 = vadd.f32 %v83_v14, %v82_v13 }
  0x94   :  { %107 = vpush %v84_v15 }
  0xc5   :  { %s108_s24 = spop %107 }
  0xc6   :  { %s86_s25 = smul.f32 0.00048828125, %s108_s24 }
  0xc8   :  { %v87_v16 = vstv %s86_s25 }
  0xc9   :  { %88 = vst [vmem:[#allocation8] sm:$0x1] %v87_v16 }
  0xca   :  { %99 = dma.vmem_to_hbm [thread:$0]  %s95_s1, 16, %s97_s23, [#allocation5]  }
  0xcb   :  { %190 = dma.done.wait [#allocation5], 16  }
  0xcc   :  { %191 = vsyncadd [#allocation5], 4294967280 }
  0xcd   :  { %104 = vsyncpa [#allocation4], 1 }
  0xce   :  { %105 = vsyncpa [#allocation7], 1 }
  0xcf   :  { %106 = vsyncpa [#allocation5], 1 }

</bundles_post_ra>
